<compile_context>
chip_gen: v5e
topology: v5e:2x2
jax: 0.10.0
libtpu: 0.0.40
codegen_flags: <defaults>
</compile_context>

<pallas_src>
import functools

import jax
import jax.numpy as jnp
from jax import lax
from jax.experimental import pallas as pl
from jax.experimental.pallas import tpu as pltpu

LANE = 128               # vreg lane width
MAX_BLOCK_ROWS = 8192    # (8192, 128) f32 block = 4 MiB; 2 inputs x 2 buffers = 16 MiB
NCORES_MAX = 2           # at most 2 TensorCores per device (v7x / megacore)
SMALL_INPUT_BYTES = 1 << 20  # below this total input size, plain jnp wins


def _num_tensorcores():
    """Best-effort TensorCores-per-device count (2 on v7x/megacore, 1 on v5e/v6e)."""
    try:
        info = pltpu.get_tpu_info()
        for attr in ("num_cores", "num_tensorcores", "tensorcores_per_chip",
                     "cores_per_chip", "core_count"):
            n = getattr(info, attr, None)
            if isinstance(n, int) and n >= 1:
                return min(int(n), NCORES_MAX)
    except Exception:
        pass
    return 1  # safe default: single TensorCore


def _huber_kernel(pred_ref, gold_ref, out_ref, acc_ref, *,
                  delta, inv_2delta, half_delta,
                  rows, block_rows, blocks_per_core, need_mask):
    p = pl.program_id(0)   # core axis
    j = pl.program_id(1)   # reduction axis ("arbitrary", last)

    @pl.when(j == 0)
    def _():
        acc_ref[...] = jnp.zeros_like(acc_ref)

    # Cast in-register: HBM traffic stays at the input dtype's width.
    d = pred_ref[...].astype(jnp.float32) - gold_ref[...].astype(jnp.float32)
    ad = jnp.abs(d)
    # smooth_l1 / huber with beta == delta (matches the PyTorch module):
    #   0.5 * d^2 / delta   if |d| < delta
    #   |d| - 0.5 * delta   otherwise
    per = jnp.where(ad < delta, d * d * inv_2delta, ad - half_delta)

    if need_mask:
        # Static flag: only traced when some block really is ragged / out of range.
        blk = p * blocks_per_core + j
        row0 = blk * block_rows
        is_full = row0 + block_rows <= rows

        @pl.when(is_full)
        def _():
            # Fast path: clean VPU accumulate, no iota / compare / select.
            acc_ref[...] += jnp.sum(per, axis=0, keepdims=True)

        @pl.when(jnp.logical_not(is_full))
        def _():
            # Ragged last block (or a clamped out-of-range block): mask rows >= rows.
            row_ids = row0 + lax.broadcasted_iota(jnp.int32, (block_rows, LANE), 0)
            masked = jnp.where(row_ids < rows, per, 0.0)
            acc_ref[...] += jnp.sum(masked, axis=0, keepdims=True)
    else:
        # Lane-dense accumulate: one sublane reduce per step, no cross-lane work.
        acc_ref[...] += jnp.sum(per, axis=0, keepdims=True)

    @pl.when(j == pl.num_programs(1) - 1)
    def _():
        # Lane-dense (1, 128) partial-sum writeback, once per core.
        out_ref[...] = acc_ref[...].reshape(1, 1, LANE)


def huber_loss_pallas(pred, gold, delta=5.0, *,
                      max_block_rows=MAX_BLOCK_ROWS,
                      min_pallas_bytes=SMALL_INPUT_BYTES):
    """Mean smooth-L1 / Huber loss (beta == delta). bf16/f16 inputs are welcome:
    they halve HBM traffic and are upcast to f32 in-register inside the kernel."""
    assert pred.shape == gold.shape
    n_elem = int(pred.size)
    delta = float(delta)
    inv_2delta = 0.5 / delta
    half_delta = 0.5 * delta

    p_flat = pred.reshape(-1)
    g_flat = gold.reshape(-1)

    def _loss_sum_jnp(p, g):
        d = p.astype(jnp.float32) - g.astype(jnp.float32)
        ad = jnp.abs(d)
        return jnp.sum(jnp.where(ad < delta, d * d * inv_2delta, ad - half_delta))

    rows = n_elem // LANE
    in_bytes = 2 * n_elem * p_flat.dtype.itemsize

    # Small-input fast path: fixed pallas_call / DMA-pipeline overhead dominates
    # tiny tensors; a fused XLA elementwise+reduce is faster.
    if rows == 0 or in_bytes < min_pallas_bytes:
        return _loss_sum_jnp(p_flat, g_flat) / n_elem

    # Aligned (rows, 128) prefix goes through the kernel; the sub-128 tail (if
    # any) is summed in plain JAX — no full-array pad / extra HBM copy.
    n_aligned = rows * LANE
    tail = n_elem - n_aligned
    p2 = p_flat[:n_aligned].reshape(rows, LANE)
    g2 = g_flat[:n_aligned].reshape(rows, LANE)

    # Block rows: full extent when it fits (always a legal block shape),
    # otherwise a multiple of 8 capped at max_block_rows.
    cap = max(8, (int(max_block_rows) // 8) * 8)
    block_rows = rows if rows <= cap else cap
    nblocks = pl.cdiv(rows, block_rows)

    # Core split: only when the chip actually has >1 TensorCore and there is
    # more than one block of work.
    ncores = _num_tensorcores()
    ncores = ncores if (ncores > 1 and nblocks >= 2) else 1
    blocks_per_core = pl.cdiv(nblocks, ncores)
    covered_rows = ncores * blocks_per_core * block_rows
    need_mask = covered_rows != rows                     # ragged and/or OOB block exists
    clamp_blocks = ncores * blocks_per_core > nblocks    # odd split -> clamp index_map

    kernel = functools.partial(
        _huber_kernel,
        delta=delta, inv_2delta=inv_2delta, half_delta=half_delta,
        rows=rows, block_rows=block_rows, blocks_per_core=blocks_per_core,
        need_mask=bool(need_mask),
    )

    def in_map(p, j):
        blk = p * blocks_per_core + j
        if clamp_blocks:
            # Never DMA past the real block count; the masked branch zeroes the
            # (duplicate) contribution of the clamped block.
            blk = jnp.minimum(blk, nblocks - 1)
        return (blk, 0)

    if ncores > 1:
        dims = (pltpu.CORE_PARALLEL, pltpu.ARBITRARY)
    else:
        dims = (pltpu.ARBITRARY, pltpu.ARBITRARY)

    block_bytes = block_rows * LANE * p2.dtype.itemsize
    # 2 inputs x 2 buffers + headroom; >= 32 MiB covers v5e's small scoped
    # default, <= 48 MiB keeps headroom inside v7x's 64 MiB physical VMEM.
    vmem_limit = min(48 * 1024 * 1024, max(32 * 1024 * 1024, 4 * block_bytes + (4 << 20)))

    cost = pl.CostEstimate(
        flops=7 * n_aligned,
        transcendentals=0,
        bytes_accessed=2 * n_aligned * p2.dtype.itemsize + ncores * LANE * 4,
    )

    partials = pl.pallas_call(
        kernel,
        out_shape=jax.ShapeDtypeStruct((ncores, 1, LANE), jnp.float32),
        grid_spec=pltpu.PrefetchScalarGridSpec(
            num_scalar_prefetch=0,
            grid=(ncores, blocks_per_core),
            in_specs=[
                pl.BlockSpec((block_rows, LANE), in_map),
                pl.BlockSpec((block_rows, LANE), in_map),
            ],
            out_specs=pl.BlockSpec((1, 1, LANE), lambda p, j: (p, 0, 0)),
            scratch_shapes=[pltpu.VMEM((1, LANE), jnp.float32)],
        ),
        compiler_params=pltpu.CompilerParams(
            dimension_semantics=dims,
            vmem_limit_bytes=int(vmem_limit),
        ),
        cost_estimate=cost,
    )(p2, g2)

    total = jnp.sum(partials)
    if tail:
        total = total + _loss_sum_jnp(p_flat[n_aligned:], g_flat[n_aligned:])
    # TODO(synk): for multi-billion-element inputs a pairwise/tree reduction of
    # the per-lane accumulator would be more precise; a single f32 running sum
    # per lane is adequate for a loss scalar.
    return total / n_elem


if __name__ == "__main__":
    key = jax.random.PRNGKey(0)
    k1, k2, k3, k4 = jax.random.split(key, 4)
    delta = 5.0

    def ref_loss(pred, gold):
        d = pred.astype(jnp.float32) - gold.astype(jnp.float32)
        ad = jnp.abs(d)
        return jnp.mean(jnp.where(ad < delta, 0.5 * d * d / delta, ad - 0.5 * delta))

    # Small NCHW-shaped tensors consistent with the module's usage.
    pred = jax.random.normal(k1, (2, 4, 16, 16), dtype=jnp.float32) * 10.0
    gold = jax.random.normal(k2, (2, 4, 16, 16), dtype=jnp.float32) * 10.0

    # Run the Pallas kernel once (force past the small-input jnp fast path).
    loss = huber_loss_pallas(pred, gold, delta=delta, min_pallas_bytes=0)
    jax.block_until_ready(loss)
    assert jnp.allclose(loss, ref_loss(pred, gold), rtol=1e-5, atol=1e-5), (
        loss, ref_loss(pred, gold))

    # Default wrapper (small-input fast path) must agree too.
    loss_fast = huber_loss_pallas(pred, gold, delta=delta)
    jax.block_until_ready(loss_fast)
    assert jnp.allclose(loss_fast, ref_loss(pred, gold), rtol=1e-5, atol=1e-5)

    # Ragged shapes: exercise the sub-128 tail handling and (with a reduced
    # max_block_rows) the pl.when-gated ragged-block mask path.
    pred_r = jax.random.normal(k3, (3, 5, 17, 19), dtype=jnp.float32) * 10.0
    gold_r = jax.random.normal(k4, (3, 5, 17, 19), dtype=jnp.float32) * 10.0
    loss_r = huber_loss_pallas(pred_r, gold_r, delta=delta,
                               min_pallas_bytes=0, max_block_rows=8)
    jax.block_until_ready(loss_r)
    assert jnp.allclose(loss_r, ref_loss(pred_r, gold_r), rtol=1e-5, atol=1e-5), (
        loss_r, ref_loss(pred_r, gold_r))

    print("KERNEL_OK")
</pallas_src>

<mosaic_0001>
module attributes {stable_mosaic.version = 11 : i64} {
  func.func @_huber_kernel(%arg0: i32, %arg1: i32, %arg2: memref<16x128xf32, #tpu.memory_space<vmem>>, %arg3: memref<16x128xf32, #tpu.memory_space<vmem>>, %arg4: memref<1x1x128xf32, #tpu.memory_space<vmem>>, %arg5: memref<1x128xf32, #tpu.memory_space<vmem>>) attributes {dimension_semantics = [#tpu.dimension_semantics<arbitrary>, #tpu.dimension_semantics<arbitrary>], iteration_bounds = array<i64: 1, 1>, scalar_prefetch = 0 : i64, scratch_operands = 1 : i64, tpu.core_type = #tpu.core_type<tc>, window_params = [{transform_indices = @transform_0, window_bounds = array<i64: 16, 128>}, {transform_indices = @transform_1, window_bounds = array<i64: 16, 128>}, {transform_indices = @transform_2, window_bounds = array<i64: 1, 1, 128>}]} {
    %c0_i32 = arith.constant 0 : i32
    %0 = arith.cmpi eq, %arg1, %c0_i32 : i32
    %1 = arith.extui %0 : i1 to i32
    %c0_i32_0 = arith.constant 0 : i32
    %2 = arith.cmpi ne, %1, %c0_i32_0 : i32
    scf.if %2 {
      %cst_13 = arith.constant 0.000000e+00 : f32
      %23 = vector.broadcast %cst_13 : f32 to vector<1x128xf32>
      %c0_14 = arith.constant 0 : index
      %c0_15 = arith.constant 0 : index
      %24 = vector.load %arg5[%c0_14, %c0_15] : memref<1x128xf32, #tpu.memory_space<vmem>>, vector<1x128xf32>
      tpu.vector_store %arg5[%c0_14, %c0_15], %23 {strides = array<i32>} : memref<1x128xf32, #tpu.memory_space<vmem>>, vector<1x128xf32>,
    } else {
    }
    %c0 = arith.constant 0 : index
    %c0_1 = arith.constant 0 : index
    %3 = vector.load %arg2[%c0, %c0_1] : memref<16x128xf32, #tpu.memory_space<vmem>>, vector<16x128xf32>
    %c0_2 = arith.constant 0 : index
    %c0_3 = arith.constant 0 : index
    %4 = vector.load %arg3[%c0_2, %c0_3] : memref<16x128xf32, #tpu.memory_space<vmem>>, vector<16x128xf32>
    %5 = arith.subf %3, %4 : vector<16x128xf32>
    %6 = math.absf %5 : vector<16x128xf32>
    %cst = arith.constant 5.000000e+00 : f32
    %7 = vector.broadcast %cst : f32 to vector<16x128xf32>
    %8 = arith.cmpf olt, %6, %7 : vector<16x128xf32>
    %9 = arith.mulf %5, %5 : vector<16x128xf32>
    %cst_4 = arith.constant 1.000000e-01 : f32
    %10 = vector.broadcast %cst_4 : f32 to vector<16x128xf32>
    %11 = arith.mulf %9, %10 : vector<16x128xf32>
    %cst_5 = arith.constant 2.500000e+00 : f32
    %12 = vector.broadcast %cst_5 : f32 to vector<16x128xf32>
    %13 = arith.subf %6, %12 : vector<16x128xf32>
    %14 = arith.select %8, %11, %13 : vector<16x128xi1>, vector<16x128xf32>
    %c0_6 = arith.constant 0 : index
    %c0_7 = arith.constant 0 : index
    %15 = vector.load %arg5[%c0_6, %c0_7] : memref<1x128xf32, #tpu.memory_space<vmem>>, vector<1x128xf32>
    %cst_8 = arith.constant dense<0.000000e+00> : vector<128xf32>
    %16 = vector.multi_reduction <add>, %14, %cst_8 [0] : vector<16x128xf32> to vector<128xf32>
    %17 = vector.shape_cast %16 : vector<128xf32> to vector<1x128xf32>
    %18 = arith.addf %15, %17 : vector<1x128xf32>
    %c0_9 = arith.constant 0 : index
    %c0_10 = arith.constant 0 : index
    %19 = vector.load %arg5[%c0_9, %c0_10] : memref<1x128xf32, #tpu.memory_space<vmem>>, vector<1x128xf32>
    tpu.vector_store %arg5[%c0_9, %c0_10], %18 {strides = array<i32>} : memref<1x128xf32, #tpu.memory_space<vmem>>, vector<1x128xf32>,
    %c0_i32_11 = arith.constant 0 : i32
    %20 = arith.cmpi eq, %arg1, %c0_i32_11 : i32
    %21 = arith.extui %20 : i1 to i32
    %c0_i32_12 = arith.constant 0 : i32
    %22 = arith.cmpi ne, %21, %c0_i32_12 : i32
    scf.if %22 {
      %c0_13 = arith.constant 0 : index
      %c0_14 = arith.constant 0 : index
      %23 = vector.load %arg5[%c0_13, %c0_14] : memref<1x128xf32, #tpu.memory_space<vmem>>, vector<1x128xf32>
      %24 = vector.shape_cast %23 : vector<1x128xf32> to vector<1x1x128xf32>
      %c0_15 = arith.constant 0 : index
      %c0_16 = arith.constant 0 : index
      %c0_17 = arith.constant 0 : index
      %25 = vector.load %arg4[%c0_15, %c0_16, %c0_17] : memref<1x1x128xf32, #tpu.memory_space<vmem>>, vector<1x1x128xf32>
      tpu.vector_store %arg4[%c0_15, %c0_16, %c0_17], %24 {strides = array<i32>} : memref<1x1x128xf32, #tpu.memory_space<vmem>>, vector<1x1x128xf32>,
    } else {
    }
    return
  }
  func.func @transform_0(%arg0: i32, %arg1: i32) -> (i32, i32) {
    %c1_i32 = arith.constant 1 : i32
    %0 = arith.muli %arg0, %c1_i32 : i32
    %1 = arith.addi %0, %arg1 : i32
    %c0_i32 = arith.constant 0 : i32
    %c0_i32_0 = arith.constant 0 : i32
    return %1, %c0_i32 : i32, i32
  }
  func.func @transform_1(%arg0: i32, %arg1: i32) -> (i32, i32) {
    %c1_i32 = arith.constant 1 : i32
    %0 = arith.muli %arg0, %c1_i32 : i32
    %1 = arith.addi %0, %arg1 : i32
    %c0_i32 = arith.constant 0 : i32
    %c0_i32_0 = arith.constant 0 : i32
    return %1, %c0_i32 : i32, i32
  }
  func.func @transform_2(%arg0: i32, %arg1: i32) -> (i32, i32, i32) {
    %c0_i32 = arith.constant 0 : i32
    %c0_i32_0 = arith.constant 0 : i32
    %c0_i32_1 = arith.constant 0 : i32
    return %arg0, %c0_i32, %c0_i32_0 : i32, i32, i32
  }
}

</mosaic_0001>

<bundles_post_ra>
// kernel: tpu_custom_call.1
= control target key start
LH: loop header
LB: loop body
LE: loop exit
PB: predicated region body
PF: predicated region fallthrough
CT: control target
= control target key end

     0   :  { %7 = vsyncpa [#allocation4], 0  ;;  %s228_s0 = inlined_call_operand.hbm [shape: f32[16,128], index: 0, kind: input, shape index: {}]   ;;  %s229_s1 = inlined_call_operand.hbm [shape: f32[16,128], index: 1, kind: input, shape index: {}]   ;;  %s230_s2 = inlined_call_operand.hbm [shape: f32[1,1,128], index: 2, kind: output, shape index: {}]  }
   0x1   :  { %8 = vsyncpa [#allocation7], 0 }
   0x2   :  { %9 = vsyncpa [#allocation5], 0  ;;  %s18_s11 = sshll.u32 %s228_s0, 4  ;;  %s198_s12 = smov [#allocation3]   ;;  %s19_s11 = int_to_ptr.hbm [resolvable:$true] %s18_s11 }
   0x3   :  { %s20_s13 = sshll.u32 %s198_s12, 4  ;;  %s35_s16 = sshll.u32 %s229_s1, 4  ;;  %s21_s13 = int_to_ptr.vmem [resolvable:$true] %s20_s13  ;;  %s36_s16 = int_to_ptr.hbm [resolvable:$true] %s35_s16 }
   0x4   :  { %s199_s17 = smov 128   ;;  %s200_s18 = smov 8  }
   0x5   :  { %26 = dma.hbm_to_vmem [thread:$0]  %s19_s11, 256, %s21_s13, [#allocation4], %s199_s17, %s199_s17, %s200_s18  }
   0x6   :  { %s201_s19 = smov [#allocation6]  }
   0x7   :  { %s37_s20 = sshll.u32 %s201_s19, 4  ;;  %s38_s20 = int_to_ptr.vmem [resolvable:$true] %s37_s20 }
   0x8   :  { %43 = dma.hbm_to_vmem [thread:$0]  %s36_s16, 256, %s38_s20, [#allocation7], %s199_s17, %s199_s17, %s200_s18  }
   0x9   :  { %192 = dma.done.wait [#allocation4], 256  }
   0xa   :  { %193 = vsyncadd [#allocation4], 4294967040 }
   0xb   :  { %194 = dma.done.wait [#allocation7], 256  }
   0xc   :  { %195 = vsyncadd [#allocation7], 4294967040  ;;  %v202_v0 = vmov 0.0   ;;  %v61_v1 = vld [vmem:[#allocation3] sm:$0xff]  ;;  %v62_v2 = vld [vmem:[#allocation3 + $0x8] sm:$0xff]  ;;  %s203_s0 = smov [#allocation8]  }
   0xd   :  { %60 = vst [vmem:[#allocation2] sm:$0x1] %v202_v0  ;;  %v63_v3 = vld [vmem:[#allocation6] sm:$0xff]  ;;  %v64_v4 = vld [vmem:[#allocation6 + $0x8] sm:$0xff]  ;;  %s99_s1 = sshll.u32 %s203_s0, 4  ;;  %s101_s23 = sshll.u32 %s230_s2, 4  ;;  %s100_s1 = int_to_ptr.vmem [resolvable:$true] %s99_s1  ;;  %s102_s23 = int_to_ptr.hbm [resolvable:$true] %s101_s23 }
   0xe   :  { %v65_v5 = vsub.f32 %v61_v1, %v63_v3  ;;  %v66_v6 = vsub.f32 %v62_v2, %v64_v4 }
  0x10   :  { %v67_v7 = vand.u32 2147483647, %v65_v5  ;;  %v71_v8 = vmul.f32 %v65_v5, %v65_v5  ;;  %v68_v9 = vand.u32 2147483647, %v66_v6  ;;  %v72_v10 = vmul.f32 %v66_v6, %v66_v6 }
  0x12   :  { %vm69_vm0 = vcmp.lt.f32.partialorder %v67_v7, 5.0  ;;  %v73_v11 = vmul.f32 0.1, %v71_v8  ;;  %v112_v12 = vadd.f32 -2.5, %v67_v7  ;;  %vm70_vm1 = vcmp.lt.f32.partialorder %v68_v9, 5.0 }
  0x13   :  { %v74_v13 = vmul.f32 0.1, %v72_v10  ;;  %v113_v14 = vadd.f32 -2.5, %v68_v9 }
  0x14   :  { %v77_v15 = vsel %vm69_vm0, %v73_v11, %v112_v12  ;;  %v79_v23 = vld [vmem:[#allocation2] sm:$0x1] }
  0x15   :  { %v78_v16 = vsel %vm70_vm1, %v74_v13, %v113_v14 }
  0x16   :  { %v80_v17 = vadd.f32 %v78_v16, %v77_v15 }
  0x18   :  { %v81_v18 = vrot.slane %v80_v17, 4 }
  0x1a   :  { %v82_v19 = vadd.f32 %v81_v18, %v80_v17 }
  0x1c   :  { %v83_v20 = vrot.slane %v82_v19, 2 }
  0x1e   :  { %v84_v21 = vadd.f32 %v83_v20, %v82_v19 }
  0x20   :  { %v85_v22 = vrot.slane %v84_v21, 1 }
  0x22   :  { %v86_v24 = vadd.f32 %v85_v22, %v84_v21 }
  0x24   :  { %v87_v25 = vadd.f32 %v86_v24, %v79_v23 }
  0x26   :  { %88 = vst [vmem:[#allocation2] sm:$0x1] %v87_v25 }
  0x2d   :  { %v92_v26 = vld [vmem:[#allocation2] sm:$0x1] }
  0x2e   :  { %93 = vst [vmem:[#allocation8] sm:$0x1] %v92_v26 }
  0x2f   :  { %104 = dma.vmem_to_hbm [thread:$0]  %s100_s1, 16, %s102_s23, [#allocation5]  }
  0x30   :  { %196 = dma.done.wait [#allocation5], 16  }
  0x31   :  { %197 = vsyncadd [#allocation5], 4294967280 }
  0x32   :  { %109 = vsyncpa [#allocation4], 1 }
  0x33   :  { %110 = vsyncpa [#allocation7], 1 }
  0x34   :  { %111 = vsyncpa [#allocation5], 1 }

</bundles_post_ra>
